<compile_context>
chip_gen: v6e
topology: v6e:2x2x1
jax: 0.10.0
libtpu: 0.0.40
codegen_flags: <defaults>
</compile_context>

<pallas_src>
import functools

import jax
import jax.numpy as jnp
import numpy as np
from jax import lax
from jax.experimental import pallas as pl
from jax.experimental.pallas import tpu as pltpu


_LANES = 128                      # vreg lane width; lane-dense stores want last dim % 128 == 0
_SUBLANE_MULTIPLE = 32            # safe sublane granularity across f32/bf16/int8/fp8 packing
_DEFAULT_BLOCK_BYTES = 4 << 20    # 4 MiB per block; double-buffered in+out = 16 MiB VMEM
_VMEM_LIMIT_BYTES = 32 << 20      # explicit scoped-VMEM limit: below physical on v5e/v6e/v7x
_MIN_PALLAS_BYTES = 512 << 10     # below ~512 KiB the custom-call launch dominates -> jnp.copy
_MAX_DMA_CHUNKS = 4               # a few concurrent DMAs saturate HBM without extra sems


# ----------------------------------------------------------------------------
# HBM -> HBM DMA copy (default materialized path): zero VMEM staging.
# ----------------------------------------------------------------------------
def _dma_copy_kernel(x_hbm, o_hbm, sem, *, n_chunks, chunk_rows):
    copies = []
    for c in range(n_chunks):
        if n_chunks == 1:
            src, dst = x_hbm, o_hbm
        else:
            sl = pl.ds(c * chunk_rows, chunk_rows)
            src, dst = x_hbm.at[sl, :], o_hbm.at[sl, :]
        cp = pltpu.make_async_copy(src, dst, sem.at[c])
        cp.start()
        copies.append(cp)
    for cp in copies:
        cp.wait()


def _pallas_copy_dma(x):
    """Identity copy running purely on the DMA engines (no VMEM staging)."""
    n_chunks, chunk_rows = 1, 0
    if x.ndim == 2:
        rows = x.shape[0]
        # Chunk along the leading dim only when chunks stay tile-aligned for
        # every dtype (multiple of 32 rows); otherwise one whole-array DMA.
        for k in range(_MAX_DMA_CHUNKS, 1, -1):
            if rows % k == 0 and (rows // k) % _SUBLANE_MULTIPLE == 0:
                n_chunks, chunk_rows = k, rows // k
                break
    kernel = functools.partial(
        _dma_copy_kernel, n_chunks=n_chunks, chunk_rows=chunk_rows)
    return pl.pallas_call(
        kernel,
        out_shape=jax.ShapeDtypeStruct(x.shape, x.dtype),
        in_specs=[pl.BlockSpec(memory_space=pl.ANY)],
        out_specs=pl.BlockSpec(memory_space=pl.ANY),
        scratch_shapes=[pltpu.SemaphoreType.DMA((n_chunks,))],
        compiler_params=pltpu.CompilerParams(has_side_effects=True),
    )(x)


# ----------------------------------------------------------------------------
# VMEM-staged, BlockSpec-pipelined copy (alternative materialized path).
# ----------------------------------------------------------------------------
def _copy_kernel(x_ref, o_ref):
    o_ref[...] = x_ref[...]


def _pallas_copy_vmem(x2d, *, block_bytes=_DEFAULT_BLOCK_BYTES):
    """Row-tiled, double-buffered identity copy of a 2-D (lane-dense) array."""
    rows, cols = x2d.shape
    row_bytes = cols * x2d.dtype.itemsize
    tb = max(block_bytes // max(row_bytes, 1), 1)
    tb = (tb // _SUBLANE_MULTIPLE) * _SUBLANE_MULTIPLE   # dtype-safe sublane multiple
    if tb < _SUBLANE_MULTIPLE or tb >= rows:
        tb = rows                                        # full-dim block escape hatch
    return pl.pallas_call(
        _copy_kernel,
        out_shape=jax.ShapeDtypeStruct((rows, cols), x2d.dtype),
        grid_spec=pltpu.PrefetchScalarGridSpec(
            num_scalar_prefetch=0,
            grid=(pl.cdiv(rows, tb),),
            in_specs=[pl.BlockSpec((tb, cols), lambda i: (i, 0))],
            out_specs=pl.BlockSpec((tb, cols), lambda i: (i, 0)),
        ),
        compiler_params=pltpu.CompilerParams(
            # Row tiles are independent -> shard across v7x's two TensorCores;
            # harmless no-op on single-core v5e/v6e.
            dimension_semantics=("parallel",),
            # 4 MiB blocks double-buffered on in+out = 16 MiB; raise scoped
            # VMEM explicitly so v5e's 16 MiB default doesn't thrash.
            vmem_limit_bytes=_VMEM_LIMIT_BYTES,
        ),
    )(x2d)


# ----------------------------------------------------------------------------
# Public API
# ----------------------------------------------------------------------------
def identity_encoder_pallas(task_emb, *, method="dma",
                            block_bytes=_DEFAULT_BLOCK_BYTES):
    """Explicitly materialized identity copy through a Pallas kernel.

    method="dma" (default): HBM->HBM DMA, zero VMEM footprint.
    method="vmem": BlockSpec-pipelined VMEM-staged copy (lane-dense layout).
    """
    b, e = task_emb.shape
    n = b * e
    lane_dense = n % _LANES == 0
    if method == "vmem":
        if lane_dense:
            out = _pallas_copy_vmem(task_emb.reshape(n // _LANES, _LANES),
                                    block_bytes=block_bytes)
            return out.reshape(b, e)
        # Odd element counts can't be made lane-dense; a single full-array
        # VMEM block could exceed scoped VMEM -> use the zero-VMEM DMA path.
        return _pallas_copy_dma(task_emb)
    if lane_dense:
        out = _pallas_copy_dma(task_emb.reshape(n // _LANES, _LANES))
        return out.reshape(b, e)
    return _pallas_copy_dma(task_emb)


def identity_encoder(task_emb, *, materialize=False, donate_input=False,
                     method="dma"):
    """Pallas equivalent of IdentityEncoder.forward: h = e.

    Default (hot) path: pure pass-through -- no kernel, no HBM round trip.
    materialize=True forces a distinct output buffer (DMA copy by default).
    donate_input=True means the caller allows reuse of the input buffer, so an
    identity "copy" is pure waste -- skip the kernel, keep an op boundary.
    """
    if not materialize:
        return task_emb
    if donate_input:
        # An aliased identity copy would re-read and re-write identical HBM
        # bytes; returning the input (behind an optimization barrier to keep
        # an explicit op boundary) is semantically identical and free.
        return lax.optimization_barrier(task_emb)
    if task_emb.size * task_emb.dtype.itemsize < _MIN_PALLAS_BYTES:
        return jnp.copy(task_emb)   # XLA native copy beats a custom-call here
    return identity_encoder_pallas(task_emb, method=method)


def identity_encoder_forward(data):
    """Mirrors the PyTorch module API: takes a dict with 'task_emb'."""
    return identity_encoder(data["task_emb"])


if __name__ == "__main__":
    key = jax.random.PRNGKey(0)
    k0, k1, k2 = jax.random.split(key, 3)

    # 1) Hot path: pure pass-through at the module's natural small shape.
    B, E = 2, 32
    task_emb = jax.random.normal(k0, (B, E), dtype=jnp.float32)
    h = identity_encoder_forward({"task_emb": task_emb})
    h = jax.block_until_ready(h)
    assert h.shape == (B, E) and h.dtype == task_emb.dtype
    assert bool(jnp.array_equal(h, task_emb))

    # 2) Small materialized copy routes to jnp.copy (below the Pallas threshold).
    h2 = jax.block_until_ready(identity_encoder(task_emb, materialize=True))
    assert h2.shape == (B, E) and bool(jnp.array_equal(h2, task_emb))

    # 3) donate_input path: no kernel launched, result identical.
    h3 = jax.block_until_ready(
        identity_encoder(task_emb, materialize=True, donate_input=True))
    assert bool(jnp.array_equal(h3, task_emb))

    # 4) HBM->HBM DMA kernel (chunked, lane-dense): (256, 1024) f32 = 1 MiB.
    B4, E4 = 256, 1024
    emb4 = jax.random.normal(k1, (B4, E4), dtype=jnp.float32)
    h4 = jax.block_until_ready(identity_encoder(emb4, materialize=True))
    assert h4.shape == (B4, E4) and h4.dtype == emb4.dtype
    assert bool(jnp.array_equal(h4, emb4))

    # 5) VMEM-staged tiled copy; small block_bytes to exercise grid > 1.
    h5 = jax.block_until_ready(
        identity_encoder_pallas(emb4, method="vmem", block_bytes=256 << 10))
    assert bool(jnp.array_equal(h5, emb4))

    # 6) Odd (non-lane-dense) shape through the DMA kernel (whole-array DMA).
    B6, E6 = 8, 33
    emb6 = jax.random.normal(k2, (B6, E6), dtype=jnp.float32)
    h6 = jax.block_until_ready(identity_encoder_pallas(emb6))
    assert h6.shape == (B6, E6) and bool(jnp.array_equal(h6, emb6))

    # Sanity check against a host-side reference for the Pallas paths.
    assert np.array_equal(np.asarray(h4), np.asarray(emb4))
    assert np.array_equal(np.asarray(h6), np.asarray(emb6))

    print("KERNEL_OK")
</pallas_src>

<mosaic_0001>
module attributes {stable_mosaic.version = 11 : i64} {
  func.func @_dma_copy_kernel(%arg0: memref<2048x128xf32, #tpu.memory_space<any>>, %arg1: memref<2048x128xf32, #tpu.memory_space<any>>, %arg2: memref<4x!tpu.dma_semaphore, #tpu.memory_space<semaphore_mem>>) attributes {dimension_semantics = [], scalar_prefetch = 0 : i64, scratch_operands = 1 : i64, tpu.core_type = #tpu.core_type<tc>} {
    %c0_i32 = arith.constant 0 : i32
    %c0_i32_0 = arith.constant 0 : i32
    %c0_i32_1 = arith.constant 0 : i32
    %0 = tpu.memref_slice %arg0[%c0_i32_0, %c0_i32_1] : memref<2048x128xf32, #tpu.memory_space<any>> -> memref<512x128xf32, #tpu.memory_space<any>>
    %c0_i32_2 = arith.constant 0 : i32
    %c0_i32_3 = arith.constant 0 : i32
    %1 = tpu.memref_slice %arg1[%c0_i32_2, %c0_i32_3] : memref<2048x128xf32, #tpu.memory_space<any>> -> memref<512x128xf32, #tpu.memory_space<any>>
    %2 = tpu.memref_slice %arg2[%c0_i32] : memref<4x!tpu.dma_semaphore, #tpu.memory_space<semaphore_mem>> -> memref<1x!tpu.dma_semaphore, #tpu.memory_space<semaphore_mem>>
    %3 = tpu.memref_squeeze %2 : memref<1x!tpu.dma_semaphore, #tpu.memory_space<semaphore_mem>> -> memref<!tpu.dma_semaphore, #tpu.memory_space<semaphore_mem>>
    tpu.enqueue_dma source(%0 : memref<512x128xf32, #tpu.memory_space<any>>) target(%1 : memref<512x128xf32, #tpu.memory_space<any>>) target_semaphore(%3 : memref<!tpu.dma_semaphore, #tpu.memory_space<semaphore_mem>>)
    %c1_i32 = arith.constant 1 : i32
    %c512_i32 = arith.constant 512 : i32
    %c0_i32_4 = arith.constant 0 : i32
    %4 = tpu.memref_slice %arg0[%c512_i32, %c0_i32_4] : memref<2048x128xf32, #tpu.memory_space<any>> -> memref<512x128xf32, #tpu.memory_space<any>>
    %c512_i32_5 = arith.constant 512 : i32
    %c0_i32_6 = arith.constant 0 : i32
    %5 = tpu.memref_slice %arg1[%c512_i32_5, %c0_i32_6] : memref<2048x128xf32, #tpu.memory_space<any>> -> memref<512x128xf32, #tpu.memory_space<any>>
    %6 = tpu.memref_slice %arg2[%c1_i32] : memref<4x!tpu.dma_semaphore, #tpu.memory_space<semaphore_mem>> -> memref<1x!tpu.dma_semaphore, #tpu.memory_space<semaphore_mem>>
    %7 = tpu.memref_squeeze %6 : memref<1x!tpu.dma_semaphore, #tpu.memory_space<semaphore_mem>> -> memref<!tpu.dma_semaphore, #tpu.memory_space<semaphore_mem>>
    tpu.enqueue_dma source(%4 : memref<512x128xf32, #tpu.memory_space<any>>) target(%5 : memref<512x128xf32, #tpu.memory_space<any>>) target_semaphore(%7 : memref<!tpu.dma_semaphore, #tpu.memory_space<semaphore_mem>>)
    %c2_i32 = arith.constant 2 : i32
    %c1024_i32 = arith.constant 1024 : i32
    %c0_i32_7 = arith.constant 0 : i32
    %8 = tpu.memref_slice %arg0[%c1024_i32, %c0_i32_7] : memref<2048x128xf32, #tpu.memory_space<any>> -> memref<512x128xf32, #tpu.memory_space<any>>
    %c1024_i32_8 = arith.constant 1024 : i32
    %c0_i32_9 = arith.constant 0 : i32
    %9 = tpu.memref_slice %arg1[%c1024_i32_8, %c0_i32_9] : memref<2048x128xf32, #tpu.memory_space<any>> -> memref<512x128xf32, #tpu.memory_space<any>>
    %10 = tpu.memref_slice %arg2[%c2_i32] : memref<4x!tpu.dma_semaphore, #tpu.memory_space<semaphore_mem>> -> memref<1x!tpu.dma_semaphore, #tpu.memory_space<semaphore_mem>>
    %11 = tpu.memref_squeeze %10 : memref<1x!tpu.dma_semaphore, #tpu.memory_space<semaphore_mem>> -> memref<!tpu.dma_semaphore, #tpu.memory_space<semaphore_mem>>
    tpu.enqueue_dma source(%8 : memref<512x128xf32, #tpu.memory_space<any>>) target(%9 : memref<512x128xf32, #tpu.memory_space<any>>) target_semaphore(%11 : memref<!tpu.dma_semaphore, #tpu.memory_space<semaphore_mem>>)
    %c3_i32 = arith.constant 3 : i32
    %c1536_i32 = arith.constant 1536 : i32
    %c0_i32_10 = arith.constant 0 : i32
    %12 = tpu.memref_slice %arg0[%c1536_i32, %c0_i32_10] : memref<2048x128xf32, #tpu.memory_space<any>> -> memref<512x128xf32, #tpu.memory_space<any>>
    %c1536_i32_11 = arith.constant 1536 : i32
    %c0_i32_12 = arith.constant 0 : i32
    %13 = tpu.memref_slice %arg1[%c1536_i32_11, %c0_i32_12] : memref<2048x128xf32, #tpu.memory_space<any>> -> memref<512x128xf32, #tpu.memory_space<any>>
    %14 = tpu.memref_slice %arg2[%c3_i32] : memref<4x!tpu.dma_semaphore, #tpu.memory_space<semaphore_mem>> -> memref<1x!tpu.dma_semaphore, #tpu.memory_space<semaphore_mem>>
    %15 = tpu.memref_squeeze %14 : memref<1x!tpu.dma_semaphore, #tpu.memory_space<semaphore_mem>> -> memref<!tpu.dma_semaphore, #tpu.memory_space<semaphore_mem>>
    tpu.enqueue_dma source(%12 : memref<512x128xf32, #tpu.memory_space<any>>) target(%13 : memref<512x128xf32, #tpu.memory_space<any>>) target_semaphore(%15 : memref<!tpu.dma_semaphore, #tpu.memory_space<semaphore_mem>>)
    %c0_i32_13 = arith.constant 0 : i32
    %c0_i32_14 = arith.constant 0 : i32
    %c0_i32_15 = arith.constant 0 : i32
    %16 = tpu.memref_slice %arg0[%c0_i32_14, %c0_i32_15] : memref<2048x128xf32, #tpu.memory_space<any>> -> memref<512x128xf32, #tpu.memory_space<any>>
    %c0_i32_16 = arith.constant 0 : i32
    %c0_i32_17 = arith.constant 0 : i32
    %17 = tpu.memref_slice %arg1[%c0_i32_16, %c0_i32_17] : memref<2048x128xf32, #tpu.memory_space<any>> -> memref<512x128xf32, #tpu.memory_space<any>>
    %18 = tpu.memref_slice %arg2[%c0_i32_13] : memref<4x!tpu.dma_semaphore, #tpu.memory_space<semaphore_mem>> -> memref<1x!tpu.dma_semaphore, #tpu.memory_space<semaphore_mem>>
    %19 = tpu.memref_squeeze %18 : memref<1x!tpu.dma_semaphore, #tpu.memory_space<semaphore_mem>> -> memref<!tpu.dma_semaphore, #tpu.memory_space<semaphore_mem>>
    tpu.wait_dma2 semaphore(%19 : memref<!tpu.dma_semaphore, #tpu.memory_space<semaphore_mem>>) src(%16 : memref<512x128xf32, #tpu.memory_space<any>>) dst(%17 : memref<512x128xf32, #tpu.memory_space<any>>)
    %c1_i32_18 = arith.constant 1 : i32
    %c512_i32_19 = arith.constant 512 : i32
    %c0_i32_20 = arith.constant 0 : i32
    %20 = tpu.memref_slice %arg0[%c512_i32_19, %c0_i32_20] : memref<2048x128xf32, #tpu.memory_space<any>> -> memref<512x128xf32, #tpu.memory_space<any>>
    %c512_i32_21 = arith.constant 512 : i32
    %c0_i32_22 = arith.constant 0 : i32
    %21 = tpu.memref_slice %arg1[%c512_i32_21, %c0_i32_22] : memref<2048x128xf32, #tpu.memory_space<any>> -> memref<512x128xf32, #tpu.memory_space<any>>
    %22 = tpu.memref_slice %arg2[%c1_i32_18] : memref<4x!tpu.dma_semaphore, #tpu.memory_space<semaphore_mem>> -> memref<1x!tpu.dma_semaphore, #tpu.memory_space<semaphore_mem>>
    %23 = tpu.memref_squeeze %22 : memref<1x!tpu.dma_semaphore, #tpu.memory_space<semaphore_mem>> -> memref<!tpu.dma_semaphore, #tpu.memory_space<semaphore_mem>>
    tpu.wait_dma2 semaphore(%23 : memref<!tpu.dma_semaphore, #tpu.memory_space<semaphore_mem>>) src(%20 : memref<512x128xf32, #tpu.memory_space<any>>) dst(%21 : memref<512x128xf32, #tpu.memory_space<any>>)
    %c2_i32_23 = arith.constant 2 : i32
    %c1024_i32_24 = arith.constant 1024 : i32
    %c0_i32_25 = arith.constant 0 : i32
    %24 = tpu.memref_slice %arg0[%c1024_i32_24, %c0_i32_25] : memref<2048x128xf32, #tpu.memory_space<any>> -> memref<512x128xf32, #tpu.memory_space<any>>
    %c1024_i32_26 = arith.constant 1024 : i32
    %c0_i32_27 = arith.constant 0 : i32
    %25 = tpu.memref_slice %arg1[%c1024_i32_26, %c0_i32_27] : memref<2048x128xf32, #tpu.memory_space<any>> -> memref<512x128xf32, #tpu.memory_space<any>>
    %26 = tpu.memref_slice %arg2[%c2_i32_23] : memref<4x!tpu.dma_semaphore, #tpu.memory_space<semaphore_mem>> -> memref<1x!tpu.dma_semaphore, #tpu.memory_space<semaphore_mem>>
    %27 = tpu.memref_squeeze %26 : memref<1x!tpu.dma_semaphore, #tpu.memory_space<semaphore_mem>> -> memref<!tpu.dma_semaphore, #tpu.memory_space<semaphore_mem>>
    tpu.wait_dma2 semaphore(%27 : memref<!tpu.dma_semaphore, #tpu.memory_space<semaphore_mem>>) src(%24 : memref<512x128xf32, #tpu.memory_space<any>>) dst(%25 : memref<512x128xf32, #tpu.memory_space<any>>)
    %c3_i32_28 = arith.constant 3 : i32
    %c1536_i32_29 = arith.constant 1536 : i32
    %c0_i32_30 = arith.constant 0 : i32
    %28 = tpu.memref_slice %arg0[%c1536_i32_29, %c0_i32_30] : memref<2048x128xf32, #tpu.memory_space<any>> -> memref<512x128xf32, #tpu.memory_space<any>>
    %c1536_i32_31 = arith.constant 1536 : i32
    %c0_i32_32 = arith.constant 0 : i32
    %29 = tpu.memref_slice %arg1[%c1536_i32_31, %c0_i32_32] : memref<2048x128xf32, #tpu.memory_space<any>> -> memref<512x128xf32, #tpu.memory_space<any>>
    %30 = tpu.memref_slice %arg2[%c3_i32_28] : memref<4x!tpu.dma_semaphore, #tpu.memory_space<semaphore_mem>> -> memref<1x!tpu.dma_semaphore, #tpu.memory_space<semaphore_mem>>
    %31 = tpu.memref_squeeze %30 : memref<1x!tpu.dma_semaphore, #tpu.memory_space<semaphore_mem>> -> memref<!tpu.dma_semaphore, #tpu.memory_space<semaphore_mem>>
    tpu.wait_dma2 semaphore(%31 : memref<!tpu.dma_semaphore, #tpu.memory_space<semaphore_mem>>) src(%28 : memref<512x128xf32, #tpu.memory_space<any>>) dst(%29 : memref<512x128xf32, #tpu.memory_space<any>>)
    return
  }
}

</mosaic_0001>

<bundles_post_ra>
// kernel: tpu_custom_call.1
= control target key start
LH: loop header
LB: loop body
LE: loop exit
PB: predicated region body
PF: predicated region fallthrough
CT: control target
= control target key end

     0   :  { %s97_s9 = smov [#allocation2]   ;;  %s98_s10 = smov 131072   ;;  %s137_s0 = inlined_call_operand.hbm [shape: f32[2048,128], index: 0, kind: input, shape index: {}]   ;;  %s138_s1 = inlined_call_operand.hbm [shape: f32[2048,128], index: 1, kind: output, shape index: {}]  }
   0x1   :  { %s13_s8 = scalar_lea.hbm %s137_s0, 8192  ;;  %s99_s11 = smov 0  }
   0x2   :  { %12 = dma.general %s137_s0, 8192, %s138_s1, %s97_s9, %s98_s10, [#allocation4], %s99_s11, 0  }
   0x3   :  { %s14_s18 = scalar_lea.hbm %s138_s1, 8192  ;;  %s100_s19 = smov [#allocation2 + $0x1]  }
   0x4   :  { %22 = dma.general %s13_s8, 8192, %s14_s18, %s100_s19, %s98_s10, [#allocation6], %s99_s11, 0  }
   0x5   :  { %s23_s22 = scalar_lea.hbm %s137_s0, 16384  ;;  %s24_s25 = scalar_lea.hbm %s138_s1, 16384 }
   0x6   :  { %s33_s28 = scalar_lea.hbm %s137_s0, 24576  ;;  %s101_s29 = smov [#allocation2 + $0x2]  }
   0x7   :  { %32 = dma.general %s23_s22, 8192, %s24_s25, %s101_s29, %s98_s10, [#allocation8], %s99_s11, 0  }
   0x8   :  { %s34_s3 = scalar_lea.hbm %s138_s1, 24576  ;;  %s102_s4 = smov [#allocation2 + $0x3]  }
   0x9   :  { %42 = dma.general %s33_s28, 8192, %s34_s3, %s102_s4, %s98_s10, [#allocation10], %s99_s11, 0  }
   0xa   :  { %89 = dma.done.wait [#allocation2], 8192 }
   0xb   :  { %90 = vsyncadd [#allocation2], 4294959104 }
   0xc   :  { %91 = dma.done.wait [#allocation2 + $0x1], 8192 }
   0xd   :  { %92 = vsyncadd [#allocation2 + $0x1], 4294959104 }
   0xe   :  { %93 = dma.done.wait [#allocation2 + $0x2], 8192 }
   0xf   :  { %94 = vsyncadd [#allocation2 + $0x2], 4294959104 }
  0x10   :  { %95 = dma.done.wait [#allocation2 + $0x3], 8192 }
  0x11   :  { %96 = vsyncadd [#allocation2 + $0x3], 4294959104 }
  0x12   :  { %52 = vsyncmov [#allocation2] }
  0x15   :  { %s53_s5 = vpop.sfrf %52 }
  0x16   :  { %p79_p0 = scmp.ne.s32.totalorder %s53_s5, 0 }
  0x18   :  { %57 = shalt.err (%p79_p0)  }
  0x19   :  { %59 = vsyncmov [#allocation2 + $0x1] }
  0x1c   :  { %s60_s0 = vpop.sfrf %59 }
  0x1d   :  { %p80_p1 = scmp.ne.s32.totalorder %s60_s0, 0 }
  0x1f   :  { %64 = shalt.err (%p80_p1)  }
  0x20   :  { %66 = vsyncmov [#allocation2 + $0x2] }
  0x23   :  { %s67_s1 = vpop.sfrf %66 }
  0x24   :  { %p81_p2 = scmp.ne.s32.totalorder %s67_s1, 0 }
  0x26   :  { %71 = shalt.err (%p81_p2)  }
  0x27   :  { %73 = vsyncmov [#allocation2 + $0x3] }
  0x2a   :  { %s74_s6 = vpop.sfrf %73 }
  0x2b   :  { %p82_p3 = scmp.ne.s32.totalorder %s74_s6, 0 }
  0x2d   :  { %78 = shalt.err (%p82_p3)  }

</bundles_post_ra>
